<compile_context>
chip_gen: v7x
topology: tpu7x:2x2x1
jax: 0.10.0
libtpu: 0.0.40
codegen_flags: <defaults>
</compile_context>

<pallas_src>
import jax
import jax.numpy as jnp
from jax.experimental import pallas as pl
from jax.experimental.pallas import tpu as pltpu


def _round_up(x, m):
    return ((x + m - 1) // m) * m


def _make_patch_embed_kernel(P, K, D):
    """Kernel factory closing over static sizes P (patches), K (in dim), D (d_model)."""

    def kernel(x_ref, w_ref, tem_ref, o_ref):
        # x_ref   : (TM, P*K)   rows of flattened patches
        # w_ref   : (K, D)      value_embedding weight, transposed to (in, out)
        # tem_ref : (1, P*D)    temporal embedding, flattened row-major (p major, d minor)
        # o_ref   : (TM, P*D)   lane-dense output slab
        if K == 1:
            # VPU path: per-row scalar broadcast times the (1, D) weight row.
            w_row = w_ref[...]                              # (1, D)
            for p in range(P):                              # static unroll, P is small
                xp = x_ref[:, p:p + 1]                      # (TM, 1) narrow per-p load
                o_ref[:, p * D:(p + 1) * D] = (
                    xp * w_row + tem_ref[:, p * D:(p + 1) * D]
                ).astype(o_ref.dtype)
        else:
            # General path: one (TM, K) @ (K, D) matmul per patch index.
            # TODO(synk): if K>1 configs become real, switch wrapper to an (M*P, K) slab
            # and do a single big matmul per tile (default module config has K == 1).
            w = w_ref[...]                                  # (K, D)
            for p in range(P):
                xp = x_ref[:, p * K:(p + 1) * K]            # (TM, K)
                y = jnp.dot(xp, w, preferred_element_type=jnp.float32)
                o_ref[:, p * D:(p + 1) * D] = (
                    y + tem_ref[:, p * D:(p + 1) * D]
                ).astype(o_ref.dtype)

    return kernel


def _extract_patches(x, patch_len, stride, his):
    """Mirror of torch permute + unfold + transpose + view (the his == T branch)."""
    B, T, N, F = x.shape
    if his != T:
        # TODO(synk): his != x.shape[1] (gap / F.pad) branch not implemented; default
        # config uses his == T.
        raise NotImplementedError("his != x.shape[1] branch not implemented")
    if patch_len == 1 and stride == 1:
        # unfold degenerates to a pure transpose: patches[b, n, t, f] = x[b, t, n, f]
        return jnp.transpose(x, (0, 2, 1, 3))              # (B, N, P=T, K=F)
    xp = jnp.transpose(x, (0, 2, 3, 1))                     # (B, N, F, T)
    num_patches = (T - patch_len) // stride + 1
    idx = jnp.arange(num_patches)[:, None] * stride + jnp.arange(patch_len)[None, :]
    p = xp[..., idx]                                        # (B, N, F, num_patches, patch_len)
    p = jnp.transpose(p, (0, 1, 3, 2, 4))                   # (B, N, num_patches, F, patch_len)
    return p.reshape(B, N, his // patch_len, -1)            # (B, N, P, K)


def _choose_tm(M, tm):
    """Row tile: multiple of 8, capped so the grid has >= 2 steps when possible."""
    if M <= 8:
        return M                                            # full-extent single block
    half = _round_up(-(-M // 2), 8)                         # round_up(cdiv(M, 2), 8)
    TM = min(tm, half)
    TM = max(8, (TM // 8) * 8)
    return min(TM, M)


def patch_embedding_pallas(x, w_value, tem, *, patch_len=1, stride=1, his=12,
                           tm=2048, out_dtype=jnp.float32):
    """
    x        : (B, his, N, F) float32
    w_value  : (d_model, patch_len * F)  -- nn.Linear weight (out, in)
    tem      : (1, 1, his, d_model)      -- tem_embedding parameter
    returns  : (B, N, his // patch_len, d_model) in out_dtype
    """
    B, T, N, F = x.shape
    D = w_value.shape[0]

    patches = _extract_patches(x, patch_len, stride, his)   # (B, N, P, K)
    P, K = patches.shape[2], patches.shape[3]
    assert w_value.shape[1] == K, (w_value.shape, K)

    M = B * N
    TM = _choose_tm(M, tm)
    G = pl.cdiv(M, TM)                                      # ragged last block is masked

    x2 = patches.reshape(M, P * K).astype(jnp.float32)       # (M, P*K) dense slab
    w_kd = jnp.transpose(w_value).astype(jnp.float32)         # (K, D)
    tem_flat = tem[0, 0, :P, :].astype(jnp.float32).reshape(1, P * D)

    kernel = _make_patch_embed_kernel(P, K, D)

    out_itemsize = jnp.dtype(out_dtype).itemsize
    cost = pl.CostEstimate(
        flops=2 * M * P * K * D + M * P * D,
        transcendentals=0,
        bytes_accessed=4 * (M * P * K + K * D + P * D) + out_itemsize * M * P * D,
    )

    # Double-buffered input/output tiles + resident weight/tem, plus slack for internal
    # scratch.  Explicit so TM=2048 compiles on v5e's 16 MiB default scoped limit too.
    vmem_bytes = (2 * TM * P * K * 4 + 2 * TM * P * D * out_itemsize
                  + K * D * 4 + P * D * 4)
    vmem_limit = int(min(max(vmem_bytes + (4 << 20), 16 << 20), 60 << 20))

    out_flat = pl.pallas_call(
        kernel,
        out_shape=jax.ShapeDtypeStruct((M, P * D), out_dtype),
        grid_spec=pltpu.PrefetchScalarGridSpec(
            num_scalar_prefetch=0,
            grid=(G,),
            in_specs=[
                pl.BlockSpec((TM, P * K), lambda i: (i, 0)),   # chunky contiguous input tile
                pl.BlockSpec((K, D), lambda i: (0, 0)),        # weight, resident
                pl.BlockSpec((1, P * D), lambda i: (0, 0)),    # temporal embedding, resident
            ],
            out_specs=pl.BlockSpec((TM, P * D), lambda i: (i, 0)),  # lane-dense wide output
        ),
        compiler_params=pltpu.CompilerParams(
            dimension_semantics=("parallel",),
            vmem_limit_bytes=vmem_limit,
        ),
        cost_estimate=cost,
    )(x2, w_kd, tem_flat)

    return out_flat.reshape(B, N, P, D)


def _reference(x, w_value, tem, patch_len, stride, his):
    patches_ref = _extract_patches(x, patch_len, stride, his)          # (B, N, P, K)
    return (jnp.einsum("bnpk,dk->bnpd", patches_ref, w_value)
            + tem[:, :, :patches_ref.shape[2], :])


if __name__ == "__main__":
    patch_len, stride, d_model, his = 1, 1, 128, 12
    key = jax.random.PRNGKey(0)

    # ---- Test 1: M divides evenly (B=2, N=8 -> M=16) ----
    B, N, F = 2, 8, 1
    k1, k2, k3, k4 = jax.random.split(key, 4)
    x = jax.random.normal(k1, (B, his, N, F), dtype=jnp.float32)
    w_value = 0.1 * jax.random.normal(k2, (d_model, patch_len * F), dtype=jnp.float32)
    tem = 0.01 * jax.random.normal(k3, (1, 1, his, d_model), dtype=jnp.float32)

    out = patch_embedding_pallas(x, w_value, tem,
                                 patch_len=patch_len, stride=stride, his=his)
    out = jax.block_until_ready(out)
    ref = _reference(x, w_value, tem, patch_len, stride, his)
    assert out.shape == (B, N, his // patch_len, d_model), out.shape
    assert jnp.allclose(out, ref, atol=1e-5, rtol=1e-5), float(jnp.max(jnp.abs(out - ref)))

    # ---- Test 2: ragged grid (B=2, N=13 -> M=26, TM=16, masked edge block) ----
    B2, N2 = 2, 13
    x2 = jax.random.normal(k4, (B2, his, N2, F), dtype=jnp.float32)
    out2 = patch_embedding_pallas(x2, w_value, tem,
                                  patch_len=patch_len, stride=stride, his=his)
    out2 = jax.block_until_ready(out2)
    ref2 = _reference(x2, w_value, tem, patch_len, stride, his)
    assert out2.shape == (B2, N2, his // patch_len, d_model), out2.shape
    assert jnp.allclose(out2, ref2, atol=1e-5, rtol=1e-5), float(jnp.max(jnp.abs(out2 - ref2)))

    # ---- Test 3: bf16 output path (write-bound kernel; compute stays f32 in-kernel) ----
    out_bf16 = patch_embedding_pallas(x, w_value, tem,
                                      patch_len=patch_len, stride=stride, his=his,
                                      out_dtype=jnp.bfloat16)
    out_bf16 = jax.block_until_ready(out_bf16)
    assert out_bf16.dtype == jnp.bfloat16
    assert jnp.allclose(out_bf16.astype(jnp.float32), ref, atol=2e-2, rtol=2e-2)

    print("KERNEL_OK")
</pallas_src>

<mosaic_0001>
module attributes {stable_mosaic.version = 11 : i64} {
  func.func @kernel(%arg0: i32, %arg1: memref<8x12xf32, #tpu.memory_space<vmem>>, %arg2: memref<1x128xf32, #tpu.memory_space<vmem>>, %arg3: memref<1x1536xf32, #tpu.memory_space<vmem>>, %arg4: memref<8x1536xf32, #tpu.memory_space<vmem>>) attributes {dimension_semantics = [#tpu.dimension_semantics<parallel>], iteration_bounds = array<i64: 2>, scalar_prefetch = 0 : i64, scratch_operands = 0 : i64, tpu.core_type = #tpu.core_type<tc>, window_params = [{transform_indices = @transform_0, window_bounds = array<i64: 8, 12>}, {pipeline_mode = #tpu.pipeline_mode<synchronous>, transform_indices = @transform_1, window_bounds = array<i64: 1, 128>}, {pipeline_mode = #tpu.pipeline_mode<synchronous>, transform_indices = @transform_2, window_bounds = array<i64: 1, 1536>}, {transform_indices = @transform_3, window_bounds = array<i64: 8, 1536>}]} {
    %c0 = arith.constant 0 : index
    %c0_0 = arith.constant 0 : index
    %0 = vector.load %arg2[%c0, %c0_0] : memref<1x128xf32, #tpu.memory_space<vmem>>, vector<1x128xf32>
    %c0_1 = arith.constant 0 : index
    %c0_2 = arith.constant 0 : index
    %1 = vector.load %arg1[%c0_1, %c0_2] : memref<8x12xf32, #tpu.memory_space<vmem>>, vector<8x1xf32>
    %2 = vector.broadcast %1 : vector<8x1xf32> to vector<8x128xf32>
    %3 = vector.broadcast %0 : vector<1x128xf32> to vector<8x128xf32>
    %4 = arith.mulf %2, %3 : vector<8x128xf32>
    %c0_3 = arith.constant 0 : index
    %c0_4 = arith.constant 0 : index
    %5 = vector.load %arg3[%c0_3, %c0_4] : memref<1x1536xf32, #tpu.memory_space<vmem>>, vector<1x128xf32>
    %6 = vector.broadcast %5 : vector<1x128xf32> to vector<8x128xf32>
    %7 = arith.addf %4, %6 : vector<8x128xf32>
    %c0_5 = arith.constant 0 : index
    %c0_6 = arith.constant 0 : index
    %8 = vector.load %arg4[%c0_5, %c0_6] : memref<8x1536xf32, #tpu.memory_space<vmem>>, vector<8x128xf32>
    tpu.vector_store %arg4[%c0_5, %c0_6], %7 {strides = array<i32>} : memref<8x1536xf32, #tpu.memory_space<vmem>>, vector<8x128xf32>,
    %c0_7 = arith.constant 0 : index
    %c1 = arith.constant 1 : index
    %9 = vector.load %arg1[%c0_7, %c1] : memref<8x12xf32, #tpu.memory_space<vmem>>, vector<8x1xf32>
    %10 = vector.broadcast %9 : vector<8x1xf32> to vector<8x128xf32>
    %11 = vector.broadcast %0 : vector<1x128xf32> to vector<8x128xf32>
    %12 = arith.mulf %10, %11 : vector<8x128xf32>
    %c0_8 = arith.constant 0 : index
    %c128 = arith.constant 128 : index
    %13 = vector.load %arg3[%c0_8, %c128] : memref<1x1536xf32, #tpu.memory_space<vmem>>, vector<1x128xf32>
    %14 = vector.broadcast %13 : vector<1x128xf32> to vector<8x128xf32>
    %15 = arith.addf %12, %14 : vector<8x128xf32>
    %c0_9 = arith.constant 0 : index
    %c128_10 = arith.constant 128 : index
    %16 = vector.load %arg4[%c0_9, %c128_10] : memref<8x1536xf32, #tpu.memory_space<vmem>>, vector<8x128xf32>
    tpu.vector_store %arg4[%c0_9, %c128_10], %15 {strides = array<i32>} : memref<8x1536xf32, #tpu.memory_space<vmem>>, vector<8x128xf32>,
    %c0_11 = arith.constant 0 : index
    %c2 = arith.constant 2 : index
    %17 = vector.load %arg1[%c0_11, %c2] : memref<8x12xf32, #tpu.memory_space<vmem>>, vector<8x1xf32>
    %18 = vector.broadcast %17 : vector<8x1xf32> to vector<8x128xf32>
    %19 = vector.broadcast %0 : vector<1x128xf32> to vector<8x128xf32>
    %20 = arith.mulf %18, %19 : vector<8x128xf32>
    %c0_12 = arith.constant 0 : index
    %c256 = arith.constant 256 : index
    %21 = vector.load %arg3[%c0_12, %c256] : memref<1x1536xf32, #tpu.memory_space<vmem>>, vector<1x128xf32>
    %22 = vector.broadcast %21 : vector<1x128xf32> to vector<8x128xf32>
    %23 = arith.addf %20, %22 : vector<8x128xf32>
    %c0_13 = arith.constant 0 : index
    %c256_14 = arith.constant 256 : index
    %24 = vector.load %arg4[%c0_13, %c256_14] : memref<8x1536xf32, #tpu.memory_space<vmem>>, vector<8x128xf32>
    tpu.vector_store %arg4[%c0_13, %c256_14], %23 {strides = array<i32>} : memref<8x1536xf32, #tpu.memory_space<vmem>>, vector<8x128xf32>,
    %c0_15 = arith.constant 0 : index
    %c3 = arith.constant 3 : index
    %25 = vector.load %arg1[%c0_15, %c3] : memref<8x12xf32, #tpu.memory_space<vmem>>, vector<8x1xf32>
    %26 = vector.broadcast %25 : vector<8x1xf32> to vector<8x128xf32>
    %27 = vector.broadcast %0 : vector<1x128xf32> to vector<8x128xf32>
    %28 = arith.mulf %26, %27 : vector<8x128xf32>
    %c0_16 = arith.constant 0 : index
    %c384 = arith.constant 384 : index
    %29 = vector.load %arg3[%c0_16, %c384] : memref<1x1536xf32, #tpu.memory_space<vmem>>, vector<1x128xf32>
    %30 = vector.broadcast %29 : vector<1x128xf32> to vector<8x128xf32>
    %31 = arith.addf %28, %30 : vector<8x128xf32>
    %c0_17 = arith.constant 0 : index
    %c384_18 = arith.constant 384 : index
    %32 = vector.load %arg4[%c0_17, %c384_18] : memref<8x1536xf32, #tpu.memory_space<vmem>>, vector<8x128xf32>
    tpu.vector_store %arg4[%c0_17, %c384_18], %31 {strides = array<i32>} : memref<8x1536xf32, #tpu.memory_space<vmem>>, vector<8x128xf32>,
    %c0_19 = arith.constant 0 : index
    %c4 = arith.constant 4 : index
    %33 = vector.load %arg1[%c0_19, %c4] : memref<8x12xf32, #tpu.memory_space<vmem>>, vector<8x1xf32>
    %34 = vector.broadcast %33 : vector<8x1xf32> to vector<8x128xf32>
    %35 = vector.broadcast %0 : vector<1x128xf32> to vector<8x128xf32>
    %36 = arith.mulf %34, %35 : vector<8x128xf32>
    %c0_20 = arith.constant 0 : index
    %c512 = arith.constant 512 : index
    %37 = vector.load %arg3[%c0_20, %c512] : memref<1x1536xf32, #tpu.memory_space<vmem>>, vector<1x128xf32>
    %38 = vector.broadcast %37 : vector<1x128xf32> to vector<8x128xf32>
    %39 = arith.addf %36, %38 : vector<8x128xf32>
    %c0_21 = arith.constant 0 : index
    %c512_22 = arith.constant 512 : index
    %40 = vector.load %arg4[%c0_21, %c512_22] : memref<8x1536xf32, #tpu.memory_space<vmem>>, vector<8x128xf32>
    tpu.vector_store %arg4[%c0_21, %c512_22], %39 {strides = array<i32>} : memref<8x1536xf32, #tpu.memory_space<vmem>>, vector<8x128xf32>,
    %c0_23 = arith.constant 0 : index
    %c5 = arith.constant 5 : index
    %41 = vector.load %arg1[%c0_23, %c5] : memref<8x12xf32, #tpu.memory_space<vmem>>, vector<8x1xf32>
    %42 = vector.broadcast %41 : vector<8x1xf32> to vector<8x128xf32>
    %43 = vector.broadcast %0 : vector<1x128xf32> to vector<8x128xf32>
    %44 = arith.mulf %42, %43 : vector<8x128xf32>
    %c0_24 = arith.constant 0 : index
    %c640 = arith.constant 640 : index
    %45 = vector.load %arg3[%c0_24, %c640] : memref<1x1536xf32, #tpu.memory_space<vmem>>, vector<1x128xf32>
    %46 = vector.broadcast %45 : vector<1x128xf32> to vector<8x128xf32>
    %47 = arith.addf %44, %46 : vector<8x128xf32>
    %c0_25 = arith.constant 0 : index
    %c640_26 = arith.constant 640 : index
    %48 = vector.load %arg4[%c0_25, %c640_26] : memref<8x1536xf32, #tpu.memory_space<vmem>>, vector<8x128xf32>
    tpu.vector_store %arg4[%c0_25, %c640_26], %47 {strides = array<i32>} : memref<8x1536xf32, #tpu.memory_space<vmem>>, vector<8x128xf32>,
    %c0_27 = arith.constant 0 : index
    %c6 = arith.constant 6 : index
    %49 = vector.load %arg1[%c0_27, %c6] : memref<8x12xf32, #tpu.memory_space<vmem>>, vector<8x1xf32>
    %50 = vector.broadcast %49 : vector<8x1xf32> to vector<8x128xf32>
    %51 = vector.broadcast %0 : vector<1x128xf32> to vector<8x128xf32>
    %52 = arith.mulf %50, %51 : vector<8x128xf32>
    %c0_28 = arith.constant 0 : index
    %c768 = arith.constant 768 : index
    %53 = vector.load %arg3[%c0_28, %c768] : memref<1x1536xf32, #tpu.memory_space<vmem>>, vector<1x128xf32>
    %54 = vector.broadcast %53 : vector<1x128xf32> to vector<8x128xf32>
    %55 = arith.addf %52, %54 : vector<8x128xf32>
    %c0_29 = arith.constant 0 : index
    %c768_30 = arith.constant 768 : index
    %56 = vector.load %arg4[%c0_29, %c768_30] : memref<8x1536xf32, #tpu.memory_space<vmem>>, vector<8x128xf32>
    tpu.vector_store %arg4[%c0_29, %c768_30], %55 {strides = array<i32>} : memref<8x1536xf32, #tpu.memory_space<vmem>>, vector<8x128xf32>,
    %c0_31 = arith.constant 0 : index
    %c7 = arith.constant 7 : index
    %57 = vector.load %arg1[%c0_31, %c7] : memref<8x12xf32, #tpu.memory_space<vmem>>, vector<8x1xf32>
    %58 = vector.broadcast %57 : vector<8x1xf32> to vector<8x128xf32>
    %59 = vector.broadcast %0 : vector<1x128xf32> to vector<8x128xf32>
    %60 = arith.mulf %58, %59 : vector<8x128xf32>
    %c0_32 = arith.constant 0 : index
    %c896 = arith.constant 896 : index
    %61 = vector.load %arg3[%c0_32, %c896] : memref<1x1536xf32, #tpu.memory_space<vmem>>, vector<1x128xf32>
    %62 = vector.broadcast %61 : vector<1x128xf32> to vector<8x128xf32>
    %63 = arith.addf %60, %62 : vector<8x128xf32>
    %c0_33 = arith.constant 0 : index
    %c896_34 = arith.constant 896 : index
    %64 = vector.load %arg4[%c0_33, %c896_34] : memref<8x1536xf32, #tpu.memory_space<vmem>>, vector<8x128xf32>
    tpu.vector_store %arg4[%c0_33, %c896_34], %63 {strides = array<i32>} : memref<8x1536xf32, #tpu.memory_space<vmem>>, vector<8x128xf32>,
    %c0_35 = arith.constant 0 : index
    %c8 = arith.constant 8 : index
    %65 = vector.load %arg1[%c0_35, %c8] : memref<8x12xf32, #tpu.memory_space<vmem>>, vector<8x1xf32>
    %66 = vector.broadcast %65 : vector<8x1xf32> to vector<8x128xf32>
    %67 = vector.broadcast %0 : vector<1x128xf32> to vector<8x128xf32>
    %68 = arith.mulf %66, %67 : vector<8x128xf32>
    %c0_36 = arith.constant 0 : index
    %c1024 = arith.constant 1024 : index
    %69 = vector.load %arg3[%c0_36, %c1024] : memref<1x1536xf32, #tpu.memory_space<vmem>>, vector<1x128xf32>
    %70 = vector.broadcast %69 : vector<1x128xf32> to vector<8x128xf32>
    %71 = arith.addf %68, %70 : vector<8x128xf32>
    %c0_37 = arith.constant 0 : index
    %c1024_38 = arith.constant 1024 : index
    %72 = vector.load %arg4[%c0_37, %c1024_38] : memref<8x1536xf32, #tpu.memory_space<vmem>>, vector<8x128xf32>
    tpu.vector_store %arg4[%c0_37, %c1024_38], %71 {strides = array<i32>} : memref<8x1536xf32, #tpu.memory_space<vmem>>, vector<8x128xf32>,
    %c0_39 = arith.constant 0 : index
    %c9 = arith.constant 9 : index
    %73 = vector.load %arg1[%c0_39, %c9] : memref<8x12xf32, #tpu.memory_space<vmem>>, vector<8x1xf32>
    %74 = vector.broadcast %73 : vector<8x1xf32> to vector<8x128xf32>
    %75 = vector.broadcast %0 : vector<1x128xf32> to vector<8x128xf32>
    %76 = arith.mulf %74, %75 : vector<8x128xf32>
    %c0_40 = arith.constant 0 : index
    %c1152 = arith.constant 1152 : index
    %77 = vector.load %arg3[%c0_40, %c1152] : memref<1x1536xf32, #tpu.memory_space<vmem>>, vector<1x128xf32>
    %78 = vector.broadcast %77 : vector<1x128xf32> to vector<8x128xf32>
    %79 = arith.addf %76, %78 : vector<8x128xf32>
    %c0_41 = arith.constant 0 : index
    %c1152_42 = arith.constant 1152 : index
    %80 = vector.load %arg4[%c0_41, %c1152_42] : memref<8x1536xf32, #tpu.memory_space<vmem>>, vector<8x128xf32>
    tpu.vector_store %arg4[%c0_41, %c1152_42], %79 {strides = array<i32>} : memref<8x1536xf32, #tpu.memory_space<vmem>>, vector<8x128xf32>,
    %c0_43 = arith.constant 0 : index
    %c10 = arith.constant 10 : index
    %81 = vector.load %arg1[%c0_43, %c10] : memref<8x12xf32, #tpu.memory_space<vmem>>, vector<8x1xf32>
    %82 = vector.broadcast %81 : vector<8x1xf32> to vector<8x128xf32>
    %83 = vector.broadcast %0 : vector<1x128xf32> to vector<8x128xf32>
    %84 = arith.mulf %82, %83 : vector<8x128xf32>
    %c0_44 = arith.constant 0 : index
    %c1280 = arith.constant 1280 : index
    %85 = vector.load %arg3[%c0_44, %c1280] : memref<1x1536xf32, #tpu.memory_space<vmem>>, vector<1x128xf32>
    %86 = vector.broadcast %85 : vector<1x128xf32> to vector<8x128xf32>
    %87 = arith.addf %84, %86 : vector<8x128xf32>
    %c0_45 = arith.constant 0 : index
    %c1280_46 = arith.constant 1280 : index
    %88 = vector.load %arg4[%c0_45, %c1280_46] : memref<8x1536xf32, #tpu.memory_space<vmem>>, vector<8x128xf32>
    tpu.vector_store %arg4[%c0_45, %c1280_46], %87 {strides = array<i32>} : memref<8x1536xf32, #tpu.memory_space<vmem>>, vector<8x128xf32>,
    %c0_47 = arith.constant 0 : index
    %c11 = arith.constant 11 : index
    %89 = vector.load %arg1[%c0_47, %c11] : memref<8x12xf32, #tpu.memory_space<vmem>>, vector<8x1xf32>
    %90 = vector.broadcast %89 : vector<8x1xf32> to vector<8x128xf32>
    %91 = vector.broadcast %0 : vector<1x128xf32> to vector<8x128xf32>
    %92 = arith.mulf %90, %91 : vector<8x128xf32>
    %c0_48 = arith.constant 0 : index
    %c1408 = arith.constant 1408 : index
    %93 = vector.load %arg3[%c0_48, %c1408] : memref<1x1536xf32, #tpu.memory_space<vmem>>, vector<1x128xf32>
    %94 = vector.broadcast %93 : vector<1x128xf32> to vector<8x128xf32>
    %95 = arith.addf %92, %94 : vector<8x128xf32>
    %c0_49 = arith.constant 0 : index
    %c1408_50 = arith.constant 1408 : index
    %96 = vector.load %arg4[%c0_49, %c1408_50] : memref<8x1536xf32, #tpu.memory_space<vmem>>, vector<8x128xf32>
    tpu.vector_store %arg4[%c0_49, %c1408_50], %95 {strides = array<i32>} : memref<8x1536xf32, #tpu.memory_space<vmem>>, vector<8x128xf32>,
    return
  }
  func.func @transform_0(%arg0: i32) -> (i32, i32) {
    %c0_i32 = arith.constant 0 : i32
    %c0_i32_0 = arith.constant 0 : i32
    return %arg0, %c0_i32 : i32, i32
  }
  func.func @transform_1(%arg0: i32) -> (i32, i32) {
    %c0_i32 = arith.constant 0 : i32
    %c0_i32_0 = arith.constant 0 : i32
    %c0_i32_1 = arith.constant 0 : i32
    return %c0_i32, %c0_i32_0 : i32, i32
  }
  func.func @transform_2(%arg0: i32) -> (i32, i32) {
    %c0_i32 = arith.constant 0 : i32
    %c0_i32_0 = arith.constant 0 : i32
    %c0_i32_1 = arith.constant 0 : i32
    return %c0_i32, %c0_i32_0 : i32, i32
  }
  func.func @transform_3(%arg0: i32) -> (i32, i32) {
    %c0_i32 = arith.constant 0 : i32
    %c0_i32_0 = arith.constant 0 : i32
    return %arg0, %c0_i32 : i32, i32
  }
}

</mosaic_0001>

<bundles_post_ra>
// kernel: tpu_custom_call.1
= control target key start
LH: loop header
LB: loop body
LE: loop exit
PB: predicated region body
PF: predicated region fallthrough
CT: control target
= control target key end

     0   :  { %8 = vsyncpa [#allocation3], 0  ;;  %s986_s0 = inlined_call_operand.hbm [shape: f32[16,12], index: 0, kind: input, shape index: {}]   ;;  %s987_s1 = inlined_call_operand.vmem [shape: f32[1,128], index: 1, kind: input, shape index: {}]   ;;  %s988_s2 = inlined_call_operand.hbm [shape: f32[1,1536], index: 2, kind: input, shape index: {}]   ;;  %s989_s3 = inlined_call_operand.hbm [shape: f32[16,1536], index: 3, kind: output, shape index: {}]  }
   0x1   :  { %10 = vsyncpa [#allocation3 + $0x1], 0 }
   0x2   :  { %11 = vsyncpa [#allocation6], 0 }
   0x3   :  { %12 = vsyncpa [#allocation4], 0 }
   0x4   :  { %14 = vsyncpa [#allocation4 + $0x1], 0  ;;  %s766_s12 = smov 0   ;;  %s768_s13 = smov 0  }
   0x5   :  { %s770_s14 = smov 0   ;;  %s772_s15 = smov 0  }
   0x6 LB: > { %s787_s16 = sadd.s32 4294967295, %s729_s15   ;;  %s493_s17 = sadd.s32 4294967294, %s729_s15   ;;  %s729_s15 = sphi %s772_s15, %s1013_s15   ;;  %s725_s14 = sphi %s770_s14, %s1012_s14   ;;  %s721_s13 = sphi %s768_s13, %s1011_s13   ;;  %s717_s12 = sphi %s766_s12, %s1010_s12  }
   0x7   : > { %p40_p0 = scmp.ne.s32.totalorder %s721_s13, %s717_s12  ;;  %p990_p1 = scmp.eq.s32.totalorder %s787_s16, 0 }
   0x8   : > { %p112_p3 = scmp.eq.s32.totalorder %s493_s17, 1  ;;  %p494_p5 = scmp.ge.s32.totalorder %s729_s15, 1 }
   0x9   : > { %p796_p4 = por %p990_p1, %p40_p0  ;;  %p119_p7 = scmp.lt.s32.totalorder %s729_s15, 3 }
   0xa   : > { %p801_p6 = por %p112_p3, %p40_p0  ;;  %s731_s21 = smov [#allocation5]  }
   0xb   : > { %s993_s18 = scalar_select %p796_p4, 1, 0 }
   0xc   : > { %s994_s19 = scalar_select %p801_p6, 1, 0 }
   0xd   : > { %p806_p8 = pnand %p494_p5, %p119_p7  ;;  %s135_s22 = sshll.u32 %s731_s21, 4  ;;  %s136_s22 = int_to_ptr.vmem [resolvable:$true] %s135_s22 }
   0xe   : > { %s814_s23 = sadd.s32 1, %s729_s15   ;;  %s27_s27 = sadd.s32 1, %s725_s14 }
   0xf   : > { %s995_s20 = scalar_select %p806_p8, 1, 0 }
  0x10   : > { %p528_p10 = pneg %p806_p8  ;;  %s24_s25 = ssub.s32 %s729_s15, %s814_s23 }
  0x11   : > { %p824_p12 = scmp.eq.s32.totalorder %s24_s25, 0  ;;  %s601_s30 = scalar_lea.hbm %s988_s2, 192 }
  0x12   : > { %p818_p11 = pnand %p528_p10, %p990_p1  ;;  %p602_p0 = scmp.ne.s32.totalorder %s988_s2, %s601_s30 }
  0x13   : > { %s997_s26 = scalar_select %p824_p12, 1, 0 }
  0x14   : > { %p603_p3 = pneg %p818_p11  ;;  %p608_p10 = scmp.lt.u32.totalorder %s601_s30, %s988_s2 }
  0x16   : > { %p604_p5 = pnand %p603_p3, %p602_p0 }
  0x18   : > { %p605_p7 = pneg %p604_p5 }
  0x1a   : > { %p610_p9 = pnand %p608_p10, %p605_p7 }
  0x1c   : > { %613 = shalt.err (!%p610_p9)
}
  0x1d   : > { %s614_s8 = scalar_lea.vmem %s136_s22, 192  ;;  %p622_p6 = scmp.lt.s32.totalorder %s136_s22, %s136_s22 }
  0x1e   : > { %p615_p1 = scmp.ne.s32.totalorder %s136_s22, %s614_s8  ;;  %p623_p4 = scmp.lt.s32.totalorder %s614_s8, %s614_s8 }
  0x20   : > { %p617_p2 = pnand %p615_p1, %p603_p3  ;;  %p624_p8 = por %p623_p4, %p622_p6 }
  0x22   : > { %p618_p13 = pneg %p617_p2 }
  0x24   : > { %p625_p12 = pnand %p624_p8, %p618_p13 }
  0x26   : > { %628 = shalt.err (!%p625_p12)
}
  0x27   : > { %531 = dma.hbm_to_vmem [thread:$0]  (!%p818_p11), %s988_s2, 192, %s136_s22, [#allocation6]  }
  0x28   : > { %p998_p1 = scmp.ne.s32.totalorder %s997_s26, 0  ;;  %p35_p2 = scmp.eq.s32.totalorder %s729_s15, 0 }
  0x29   : > { %p999_p4 = scmp.ne.s32.totalorder %s725_s14, %s721_s13  ;;  %p1000_p6 = scmp.eq.s32.totalorder %s787_s16, 1 }
  0x2a   : > { %s850_s11 = scalar_select %p998_p1, %s725_s14, %s27_s27  }
  0x2b   : > { %p858_p8 = por %p1000_p6, %p999_p4  ;;  %p541_p9 = scmp.lt.s32.totalorder %s729_s15, 2 }
  0x2c   : > { %s146_s21 = sand.u32 1, %s725_s14   ;;  %p1002_p12 = pmov %p999_p4 }
  0x2d   : > { %s497_s24 = sshll.u32 %s146_s21, 3  ;;  %s498_s25 = sshll.u32 %s729_s15, 7 }
  0x2e   : > { %p36_p13 = por %p35_p2, %p1002_p12  ;;  %s871_s22 = scalar_lea.hbm %s986_s0, %s498_s25 }
  0x2f   : > { %s150_s26 = scalar_lea.vmem [#allocation2], %s497_s24  ;;  %s147_s4 = scalar_lea.sflag [#allocation3], %s146_s21 }
  0x30   : > { %s157_s27 = sshll.u32 %s150_s26, 4  ;;  %p873_p11 = pnand %p541_p9, %p36_p13  ;;  %s877_s27 = int_to_ptr.vmem [resolvable:$true] %s157_s27 }
  0x31   : > { %s629_s5 = scalar_lea.hbm %s871_s22, 128  ;;  %s634_s8 = scalar_lea.hbm %s986_s0, 256 }
  0x32   : > { %p630_p0 = scmp.ne.s32.totalorder %s871_s22, %s629_s5  ;;  %p631_p3 = pneg %p873_p11 }
  0x33   : > { %p635_p10 = scmp.lt.u32.totalorder %s871_s22, %s986_s0  ;;  %p636_p1 = scmp.lt.u32.totalorder %s634_s8, %s629_s5 }
  0x34   : > { %p632_p5 = pnand %p631_p3, %p630_p0  ;;  %p638_p4 = scmp.lt.u32.totalorder %s629_s5, %s871_s22 }
  0x35   : > { %p637_p2 = por %p636_p1, %p635_p10 }
  0x36   : > { %p633_p7 = pneg %p632_p5 }
  0x37   : > { %p639_p6 = por %p638_p4, %p637_p2 }
  0x39   : > { %p640_p9 = pnand %p639_p6, %p633_p7 }
  0x3b   : > { %643 = shalt.err (!%p640_p9)
}
  0x3c   : > { %s644_s21 = scalar_lea.vmem %s877_s27, 128  ;;  %s732_s24 = smov [#allocation2]  }
  0x3d   : > { %p645_p12 = scmp.ne.s32.totalorder %s877_s27, %s644_s21  ;;  %s649_s25 = sshll.u32 %s732_s24, 4  ;;  %s650_s25 = int_to_ptr.vmem [resolvable:$false] %s649_s25 }
  0x3e   : > { %s651_s28 = scalar_lea.vmem %s650_s25, 256  ;;  %p652_p5 = scmp.lt.s32.totalorder %s877_s27, %s650_s25 }
  0x3f   : > { %p647_p13 = pnand %p645_p12, %p631_p3  ;;  %p653_p10 = scmp.lt.s32.totalorder %s651_s28, %s644_s21 }
  0x41   : > { %p648_p0 = pneg %p647_p13  ;;  %p654_p1 = por %p653_p10, %p652_p5 }
  0x43   : > { %p655_p2 = pnand %p654_p1, %p648_p0 }
  0x45   : > { %658 = shalt.err (!%p655_p2)
}
  0x46   : > { %535 = dma.hbm_to_vmem [thread:$0]  (!%p873_p11), %s871_s22, 128, %s877_s27, %s147_s4  }
  0x47   : > { %p1004_p7 = scmp.ne.s32.totalorder %s995_s20, 0 }
  0x48   : > { %s907_s29 = sand.u32 (!%p1004_p7), 1, %s721_s13   ;;  %p1005_p3 = scmp.ne.s32.totalorder (!%p1004_p7), %s993_s18, 0 }
  0x49   : > { %166 = sbr.rel (%p1004_p7) target bundleno = 262 (0x106), region = 32  ;;  %s500_s26 = sshll.u32 (!%p1004_p7), %s907_s29, 3 }
  0x4a   : > { %s169_s5 = scalar_lea.sflag (!%p1004_p7), [#allocation3], %s907_s29  ;;  %s172_s6 = scalar_lea.vmem (!%p1004_p7), [#allocation2], %s500_s26 }
  0x50   : > { %704 = dma.done.wait (%p1005_p3), %s169_s5, 128  }
  0x51   : > { %706 = vsyncadd (%p1005_p3), %s169_s5, 4294967168  ;;  %p1006_p4 = scmp.eq.s32.totalorder %s787_s16, 0 }
  0x53   : > { %708 = dma.done.wait (%p1006_p4), [#allocation6], 192   ;;  %p1007_p11 = pmov %p1006_p4 }
  0x54   : > { %v733_v0 = vmov 2   ;;  %v734_v1 = vmov 0   ;;  %v238_v2 = vld [vmem:[%s172_s6] sm:$0xff]  ;;  %v735_v3 = vmov 3   ;;  %v736_v4 = vmov 1   ;;  %s518_s18 = smul.u32 96, %s907_s29 }
  0x55   : > { %710 = vsyncadd (%p1007_p11), [#allocation6], 4294967104  ;;  %591 = vset.pattern.permute.xlu1 %v733_v0  ;;  %589 = vset.pattern.permute.xlu0 %v734_v1  ;;  %v737_v5 = vmov 4   ;;  %v738_v6 = vmov 5   ;;  %v739_v7 = vmov 6   ;;  %v740_v8 = vmov 8  }
  0x56   : > { %241 = vperm.xlu1 %591, %v238_v2   ;;  %203 = vperm.xlu0 %589, %v238_v2   ;;  %v741_v9 = vmov 7   ;;  %v742_v10 = vmov 11   ;;  %v743_v11 = vmov 9   ;;  %v744_v12 = vmov 10   ;;  %v502_v13 = vld [vmem:[%s987_s1] ss:$0 sm:$0xff] }
  0x57   : > { %v505_v14 = vld [vmem:[#allocation5 + $0x2] ss:$0 sm:$0xff]  ;;  %v503_v16 = vld [vmem:[#allocation5] ss:$0 sm:$0xff]  ;;  %s923_s27 = scalar_lea.vmem [#allocation7], %s518_s18  ;;  %s519_s30 = smul.u32 1536, %s787_s16 }
  0x58   : > { %v506_v22 = vld [vmem:[#allocation5 + $0x3] ss:$0 sm:$0xff]  ;;  %v504_v24 = vld [vmem:[#allocation5 + $0x1] ss:$0 sm:$0xff]  ;;  %v507_v30 = vld [vmem:[#allocation5 + $0x4] ss:$0 sm:$0xff] }
  0x59   : > { %v508_v32 = vld [vmem:[#allocation5 + $0x5] ss:$0 sm:$0xff]  ;;  %v509_v38 = vld [vmem:[#allocation5 + $0x6] ss:$0 sm:$0xff]  ;;  %v511_v40 = vld [vmem:[#allocation5 + $0x8] ss:$0 sm:$0xff]  ;;  %s941_s9 = scalar_lea.hbm %s989_s3, %s519_s30 }
  0x5a   : > { %592 = vset.pattern.permute.xlu1 %v735_v3  ;;  %590 = vset.pattern.permute.xlu0 %v736_v4  ;;  %v510_v46 = vld [vmem:[#allocation5 + $0x7] ss:$0 sm:$0xff]  ;;  %v514_v48 = vld [vmem:[#allocation5 + $0xb] ss:$0 sm:$0xff]  ;;  %v512_v54 = vld [vmem:[#allocation5 + $0x9] ss:$0 sm:$0xff] }
  0x5b   : > { %257 = vperm.xlu1 %592, %v238_v2   ;;  %225 = vperm.xlu0 %590, %v238_v2   ;;  %v513_v58 = vld [vmem:[#allocation5 + $0xa] ss:$0 sm:$0xff]  ;;  %s413_s4 = sshll.u32 %s923_s27, 4  ;;  %s399_s10 = scalar_lea.sflag [#allocation4], %s907_s29  ;;  %s943_s4 = int_to_ptr.vmem [resolvable:$true] %s413_s4 }
  0x5c   : > { %s659_s21 = scalar_lea.vmem %s943_s4, 1536  ;;  %s745_s16 = smov [#allocation7]  }
  0x5d   : > { %p660_p6 = scmp.ne.s32.totalorder %s943_s4, %s659_s21  ;;  %s663_s24 = sshll.u32 %s745_s16, 4  ;;  %s664_s24 = int_to_ptr.vmem [resolvable:$false] %s663_s24 }
  0x5e   : > { %s665_s25 = scalar_lea.vmem %s664_s24, 3072  ;;  %p666_p13 = scmp.lt.s32.totalorder %s943_s4, %s664_s24 }
  0x5f   : > { %593 = vset.pattern.permute.xlu1 %v737_v5  ;;  %594 = vset.pattern.permute.xlu0 %v738_v6  ;;  %p661_p9 = pnand %p660_p6, %p858_p8  ;;  %p667_p0 = scmp.lt.s32.totalorder %s665_s25, %s659_s21 }
  0x60   : > { %273 = vperm.xlu1 %593, %v238_v2   ;;  %289 = vperm.xlu0 %594, %v238_v2  }
  0x61   : > { %p662_p12 = pneg %p661_p9  ;;  %p668_p5 = por %p667_p0, %p666_p13 }
  0x63   : > { %p669_p10 = pnand %p668_p5, %p662_p12 }
  0x64   : > { %595 = vset.pattern.permute.xlu1 %v739_v7  ;;  %597 = vset.pattern.permute.xlu0 %v740_v8 }
  0x65   : > { %305 = vperm.xlu1 %595, %v238_v2   ;;  %337 = vperm.xlu0 %597, %v238_v2  }
  0x69   : > { %596 = vset.pattern.permute.xlu1 %v741_v9  ;;  %600 = vset.pattern.permute.xlu0 %v742_v10 }
  0x6a   : > { %321 = vperm.xlu1 %596, %v238_v2   ;;  %385 = vperm.xlu0 %600, %v238_v2  }
  0x6e   : > { %598 = vset.pattern.permute.xlu1 %v743_v11 }
  0x6f   : > { %353 = vperm.xlu1 %598, %v238_v2  }
  0x73   : > { %599 = vset.pattern.permute.xlu1 %v744_v12 }
  0x74   : > { %369 = vperm.xlu1 %599, %v238_v2  }
  0xd5   : > { %v242_v15 = vpop.permute.xlu1 %241  ;;  %v204_v17 = vpop.permute.xlu0 %203 }
  0xd6   : > { %v244_v18 = vmul.f32 %v502_v13, %v242_v15  ;;  %v212_v19 = vmul.f32 %v502_v13, %v204_v17 }
  0xd8   : > { %v252_v20 = vadd.f32 %v505_v14, %v244_v18  ;;  %v220_v21 = vadd.f32 %v503_v16, %v212_v19 }
  0xda   : > { %253 = vst [vmem:[%s923_s27 + $0x10] sm:$0xff] %v252_v20  ;;  %v258_v23 = vpop.permute.xlu1 %257  ;;  %221 = vst [vmem:[%s923_s27] sm:$0xff] %v220_v21  ;;  %v226_v25 = vpop.permute.xlu0 %225 }
  0xdb   : > { %v260_v26 = vmul.f32 %v502_v13, %v258_v23  ;;  %v228_v27 = vmul.f32 %v502_v13, %v226_v25 }
  0xdd   : > { %v268_v28 = vadd.f32 %v506_v22, %v260_v26  ;;  %v236_v29 = vadd.f32 %v504_v24, %v228_v27 }
  0xdf   : > { %269 = vst [vmem:[%s923_s27 + $0x18] sm:$0xff] %v268_v28  ;;  %v274_v31 = vpop.permute.xlu1 %273  ;;  %237 = vst [vmem:[%s923_s27 + $0x8] sm:$0xff] %v236_v29  ;;  %v290_v33 = vpop.permute.xlu0 %289 }
  0xe0   : > { %v276_v34 = vmul.f32 %v502_v13, %v274_v31  ;;  %v292_v35 = vmul.f32 %v502_v13, %v290_v33 }
  0xe2   : > { %v284_v36 = vadd.f32 %v507_v30, %v276_v34  ;;  %v300_v37 = vadd.f32 %v508_v32, %v292_v35 }
  0xe4   : > { %285 = vst [vmem:[%s923_s27 + $0x20] sm:$0xff] %v284_v36  ;;  %v306_v39 = vpop.permute.xlu1 %305  ;;  %301 = vst [vmem:[%s923_s27 + $0x28] sm:$0xff] %v300_v37  ;;  %v338_v41 = vpop.permute.xlu0 %337 }
  0xe5   : > { %v308_v42 = vmul.f32 %v502_v13, %v306_v39  ;;  %v340_v43 = vmul.f32 %v502_v13, %v338_v41 }
  0xe7   : > { %v316_v44 = vadd.f32 %v509_v38, %v308_v42  ;;  %v348_v45 = vadd.f32 %v511_v40, %v340_v43 }
  0xe9   : > { %317 = vst [vmem:[%s923_s27 + $0x30] sm:$0xff] %v316_v44  ;;  %v322_v47 = vpop.permute.xlu1 %321  ;;  %349 = vst [vmem:[%s923_s27 + $0x40] sm:$0xff] %v348_v45  ;;  %v386_v49 = vpop.permute.xlu0 %385 }
  0xea   : > { %v324_v50 = vmul.f32 %v502_v13, %v322_v47  ;;  %v388_v51 = vmul.f32 %v502_v13, %v386_v49 }
  0xec   : > { %v332_v52 = vadd.f32 %v510_v46, %v324_v50  ;;  %v396_v53 = vadd.f32 %v514_v48, %v388_v51 }
  0xee   : > { %333 = vst [vmem:[%s923_s27 + $0x38] sm:$0xff] %v332_v52  ;;  %v354_v55 = vpop.permute.xlu1 %353  ;;  %397 = vst [vmem:[%s923_s27 + $0x58] sm:$0xff] %v396_v53 }
  0xef   : > { %v356_v56 = vmul.f32 %v502_v13, %v354_v55 }
  0xf1   : > { %v364_v57 = vadd.f32 %v512_v54, %v356_v56 }
  0xf3   : > { %365 = vst [vmem:[%s923_s27 + $0x48] sm:$0xff] %v364_v57  ;;  %v370_v59 = vpop.permute.xlu1 %369 }
  0xf4   : > { %v372_v60 = vmul.f32 %v502_v13, %v370_v59 }
  0xf6   : > { %v380_v61 = vadd.f32 %v513_v58, %v372_v60 }
  0xf8   : > { %381 = vst [vmem:[%s923_s27 + $0x50] sm:$0xff] %v380_v61 }
  0xf9   : > { %672 = shalt.err (!%p669_p10)
}
  0xfa   : > { %s673_s28 = scalar_lea.hbm %s941_s9, 1536  ;;  %s677_s5 = scalar_lea.hbm %s989_s3, 3072 }
  0xfb   : > { %p674_p1 = scmp.ne.s32.totalorder %s941_s9, %s673_s28  ;;  %p678_p3 = scmp.lt.u32.totalorder %s941_s9, %s989_s3 }
  0xfc   : > { %p679_p4 = scmp.lt.u32.totalorder %s677_s5, %s673_s28  ;;  %p681_p6 = scmp.lt.u32.totalorder %s673_s28, %s941_s9 }
  0xfd   : > { %p675_p2 = pnand %p674_p1, %p858_p8 }
  0xfe   : > { %p680_p11 = por %p679_p4, %p678_p3 }
  0xff   : > { %p676_p7 = pneg %p675_p2 }
 0x100   : > { %p682_p9 = por %p681_p6, %p680_p11 }
 0x102   : > { %p683_p12 = pnand %p682_p9, %p676_p7 }
 0x104   : > { %686 = shalt.err (!%p683_p12)
}
 0x105   : > { %526 = dma.vmem_to_hbm [thread:$0]  (%p858_p8), %s943_s4, 1536, %s941_s9, %s399_s10  }
 0x106 PF: > { %s425_s20 = sand.u32 1, %s717_s12   ;;  %p1008_p13 = scmp.ne.s32.totalorder %s994_s19, 0 }
 0x107   : > { %p1009_p0 = scmp.ge.s32.totalorder %s729_s15, 2  ;;  %s426_s22 = scalar_lea.sflag [#allocation4], %s425_s20 }
 0x109   : > { %p537_p5 = pnand %p1009_p0, %p1008_p13 }
 0x10b   : > { %712 = dma.done.wait (!%p537_p5), %s426_s22, 1536  }
 0x10c   : > { %714 = vsyncadd (!%p537_p5), %s426_s22, 4294965760  ;;  %p17_p10 = scmp.ge.s32.totalorder %s814_s23, 4   ;;  %s1010_s12 = smov %s721_s13 }
 0x10d   : > { %s1011_s13 = smov %s725_s14  ;;  %s1012_s14 = smov %s850_s11 }
 0x10e   : > { %s1013_s15 = smov %s814_s23  ;;  %19 = sbr.rel (!%p17_p10) target bundleno = 6 (0x6), region = 81 }
 0x115   :  { %431 = vsyncpa [#allocation3], 1 }
 0x116   :  { %433 = vsyncpa [#allocation3 + $0x1], 1 }
 0x117   :  { %434 = vsyncpa [#allocation6], 1 }
 0x118   :  { %435 = vsyncpa [#allocation4], 1 }
 0x119   :  { %437 = vsyncpa [#allocation4 + $0x1], 1 }

</bundles_post_ra>
